<compile_context>
chip_gen: v6e
topology: v6e:2x2x1
jax: 0.10.0
libtpu: 0.0.40
codegen_flags: <defaults>
</compile_context>

<pallas_src>
import jax
import jax.numpy as jnp
from jax.experimental import pallas as pl
from jax.experimental.pallas import tpu as pltpu

# ---- small synthetic CLIP-like vision-tower hyperparameters ----------------
NUM_VIEWS = 2          # number of .png "files" in the folder
IMG = 16               # image H = W after the (emulated) image processor
CHANNELS = 3
PATCH = 8
GRID_HW = IMG // PATCH             # 2
NUM_PATCHES = GRID_HW * GRID_HW    # 4
SEQ = NUM_PATCHES + 1              # 5  (CLS + patches)
HIDDEN = 32
NUM_HEADS = 2
HEAD_DIM = HIDDEN // NUM_HEADS     # 16
MLP = 64
EMBED = 16                         # CLIP image_embeds dim
EMBED_PAD = 128                    # lane-dense padded output width
SLAB_W = 128                       # lane width of the packed weight slab
QKV_N = 3 * HIDDEN                 # 96, fused q|k|v projection width
PATCH_DIM = CHANNELS * PATCH * PATCH   # 192
LN_EPS = 1e-5

# static row offsets of the packed bf16 weight slab (rows, SLAB_W lanes)
W_PATCH_ROW = 0                           # (PATCH_DIM, HIDDEN)
W_QKV_ROW = W_PATCH_ROW + PATCH_DIM       # (HIDDEN, QKV_N)   q pre-scaled
W_O_ROW = W_QKV_ROW + HIDDEN              # (HIDDEN, HIDDEN)
W_1_ROW = W_O_ROW + HIDDEN                # (HIDDEN, MLP)
W_2_ROW = W_1_ROW + HIDDEN                # (MLP, HIDDEN)
W_PROJ_ROW = W_2_ROW + MLP                # (HIDDEN, EMBED_PAD)
N_SLAB_ROWS = W_PROJ_ROW + HIDDEN         # 384

# f32 vector-table row order (after the V*SEQ tiled cls+pos rows)
_VEC_NAMES = ("preln_g", "preln_b", "ln1_g", "ln1_b", "b_qkv", "bo",
              "ln2_g", "ln2_b", "b1", "b2", "postln_g", "postln_b")


def _vec_offsets(num_views):
    m = num_views * SEQ
    return m, {n: m + i for i, n in enumerate(_VEC_NAMES)}


def clip_vision_kernel(
    patches_ref,   # (V*SEQ, PATCH_DIM) bf16; row v*SEQ of each view is zeros (CLS slot)
    wslab_ref,     # (N_SLAB_ROWS, SLAB_W) bf16 packed weight slab
    vecs_ref,      # (V*SEQ + 12, SLAB_W) f32  tiled cls+pos / LN params / biases
    out_ref,       # (V, EMBED_PAD) f32
):
    f32, bf16 = jnp.float32, jnp.bfloat16
    V = out_ref.shape[0]
    M, r = _vec_offsets(V)

    def mm(a16, row, k, n):
        # bf16 MXU inputs, f32 accumulation; weight read straight from the slab
        return jnp.dot(a16, wslab_ref[row:row + k, :n],
                       preferred_element_type=f32)

    def vrow(row, n=HIDDEN):
        return vecs_ref[row:row + 1, :n]

    def layernorm(x, gname, bname):
        mu = jnp.mean(x, axis=-1, keepdims=True)
        var = jnp.mean((x - mu) ** 2, axis=-1, keepdims=True)
        return (x - mu) * jax.lax.rsqrt(var + LN_EPS) * vrow(r[gname]) + vrow(r[bname])

    # --- patch embedding (one 2D matmul over all views) + cls/pos -----------
    # The all-zero patch row per view yields a zero CLS slot; the tiled
    # cls+pos rows fill it in (valid because CLIP's patch conv has no bias).
    x = mm(patches_ref[...], W_PATCH_ROW, PATCH_DIM, HIDDEN)      # (M, HIDDEN) f32
    x = x + vecs_ref[0:M, :HIDDEN]

    # --- pre_layrnorm --------------------------------------------------------
    x = layernorm(x, "preln_g", "preln_b")

    # --- one pre-norm transformer encoder layer ------------------------------
    res = x
    h16 = layernorm(x, "ln1_g", "ln1_b").astype(bf16)             # cast once, reused by q/k/v

    # fused QKV: one (M, HIDDEN) x (HIDDEN, 96) push; softmax scale folded into wq/bq
    qkv = mm(h16, W_QKV_ROW, HIDDEN, QKV_N) + vrow(r["b_qkv"], QKV_N)   # (M, 96)
    qkv = qkv.reshape(V, SEQ, QKV_N)

    def heads(off):
        # static 16-wide lane slices -> per-(head, view) batch, b = head*V + view
        return jnp.concatenate(
            [qkv[:, :, off + j * HEAD_DIM: off + (j + 1) * HEAD_DIM]
             for j in range(NUM_HEADS)], axis=0).astype(bf16)     # (NUM_HEADS*V, SEQ, HEAD_DIM)

    q, k, v = heads(0), heads(HIDDEN), heads(2 * HIDDEN)

    s = jnp.einsum("bqd,bkd->bqk", q, k, preferred_element_type=f32)    # (B, SEQ, SEQ)
    p = jnp.exp(s - jnp.max(s, axis=-1, keepdims=True))
    p = p * pl.reciprocal(jnp.sum(p, axis=-1, keepdims=True), approx=True)
    o = jnp.einsum("bqk,bkd->bqd", p.astype(bf16), v, preferred_element_type=f32)

    # merge heads along the lane axis, then one 2D output projection
    o = jnp.concatenate([o[j * V:(j + 1) * V] for j in range(NUM_HEADS)], axis=-1)  # (V, SEQ, HIDDEN)
    attn = mm(o.reshape(M, HIDDEN).astype(bf16), W_O_ROW, HIDDEN, HIDDEN) + vrow(r["bo"])
    x = res + attn

    # --- MLP with quick-GELU --------------------------------------------------
    res = x
    h = mm(layernorm(x, "ln2_g", "ln2_b").astype(bf16), W_1_ROW, HIDDEN, MLP) \
        + vrow(r["b1"], MLP)                                      # (M, MLP)
    h = h * jax.nn.sigmoid(1.702 * h)                             # CLIP quick_gelu
    x = res + mm(h.astype(bf16), W_2_ROW, MLP, HIDDEN) + vrow(r["b2"])

    # --- pooled (CLS) output, post-layernorm, visual projection --------------
    cls_tok = x.reshape(V, SEQ, HIDDEN)[:, 0, :]                  # (V, HIDDEN)
    cls_tok = layernorm(cls_tok, "postln_g", "postln_b")
    # wproj is zero-padded to EMBED_PAD in the slab -> one lane-dense 2D store
    out_ref[...] = mm(cls_tok.astype(bf16), W_PROJ_ROW, HIDDEN, EMBED_PAD)


def _unfold_patches(pixel_values):
    """NCHW images -> (V*SEQ, PATCH_DIM) with a leading all-zero CLS row per view.

    Patch pixels are flattened in (C, ph, pw) order, matching a PyTorch conv
    weight of shape [hidden, C, p, p] flattened as w.reshape(hidden, -1).T.
    """
    V = pixel_values.shape[0]
    p = pixel_values.reshape(V, CHANNELS, GRID_HW, PATCH, GRID_HW, PATCH)
    p = p.transpose(0, 2, 4, 1, 3, 5)                     # (V, gh, gw, C, ph, pw)
    patches = p.reshape(V, NUM_PATCHES, PATCH_DIM)
    patches = jnp.concatenate(
        [jnp.zeros((V, 1, PATCH_DIM), patches.dtype), patches], axis=1)
    return patches.reshape(V * SEQ, PATCH_DIM).astype(jnp.bfloat16)


def pack_params(params, num_views):
    """One-time, LOAD-TIME layout plumbing of the f32 module weights:
      * all matmul weights packed into one lane-dense (N_SLAB_ROWS, 128) bf16
        slab at static row offsets (q/k/v fused side-by-side, wq/bq pre-scaled
        by 1/sqrt(head_dim), wproj zero-padded to EMBED_PAD),
      * cls+pos (tiled per view), LN params and all biases packed into one
        (V*SEQ + 12, 128) f32 vector table.
    Runs once at model-load time, outside the per-call jit path.
    """
    f32, bf16 = jnp.float32, jnp.bfloat16
    scale = HEAD_DIM ** -0.5

    def pad_w(w):
        out = jnp.zeros((w.shape[0], SLAB_W), f32)
        return out.at[:, :w.shape[1]].set(w.astype(f32))

    # --- bf16 weight slab ----------------------------------------------------
    w_qkv = jnp.concatenate(
        [params["wq"] * scale, params["wk"], params["wv"]], axis=1)      # (HIDDEN, 96)
    wslab = jnp.concatenate(
        [pad_w(params["w_patch"]),     # rows [0, 192)
         pad_w(w_qkv),                 # [192, 224)
         pad_w(params["wo"]),          # [224, 256)
         pad_w(params["w1"]),          # [256, 288)
         pad_w(params["w2"]),          # [288, 352)
         pad_w(params["wproj"])],      # [352, 384)   zero-padded past EMBED
        axis=0).astype(bf16)
    assert wslab.shape == (N_SLAB_ROWS, SLAB_W)

    # --- f32 vector table ----------------------------------------------------
    cls_pos = params["pos"].at[0].add(params["cls"][0])                  # (SEQ, HIDDEN)
    cls_pos_tiled = jnp.tile(cls_pos, (num_views, 1))                    # (V*SEQ, HIDDEN)
    vec_rows = {
        "preln_g": params["preln_g"], "preln_b": params["preln_b"],
        "ln1_g": params["ln1_g"], "ln1_b": params["ln1_b"],
        "b_qkv": jnp.concatenate(
            [params["bq"] * scale, params["bk"], params["bv"]], axis=1),
        "bo": params["bo"],
        "ln2_g": params["ln2_g"], "ln2_b": params["ln2_b"],
        "b1": params["b1"], "b2": params["b2"],
        "postln_g": params["postln_g"], "postln_b": params["postln_b"],
    }
    M, offs = _vec_offsets(num_views)
    ordered = sorted(vec_rows, key=lambda n: offs[n])
    vecs = jnp.concatenate(
        [pad_w(cls_pos_tiled)] + [pad_w(vec_rows[n]) for n in ordered],
        axis=0).astype(f32)
    assert vecs.shape == (M + len(_VEC_NAMES), SLAB_W)

    return wslab, vecs


@jax.jit
def multi_view_image_features(pixel_values, wslab, vecs):
    """pixel_values: [num_views, C, IMG, IMG] (NCHW) -> [1, num_views, EMBED]."""
    V = pixel_values.shape[0]
    patches = _unfold_patches(pixel_values)

    vmem = pltpu.MemorySpace.VMEM
    out = pl.pallas_call(
        clip_vision_kernel,
        out_shape=jax.ShapeDtypeStruct((V, EMBED_PAD), jnp.float32),
        in_specs=[pl.BlockSpec(memory_space=vmem)] * 3,
        out_specs=pl.BlockSpec(memory_space=vmem),
    )(patches, wslab, vecs)

    # torch.cat(image_features, dim=1) of per-image [1, 1, E] -> [1, V, E];
    # strip the lane padding that was added for a dense store.
    return out[:, :EMBED][None]


def init_params(key):
    ks = jax.random.split(key, 10)

    def nrm(k, shape, scale=0.02):
        return (scale * jax.random.normal(k, shape)).astype(jnp.float32)

    ones = lambda s: jnp.ones(s, jnp.float32)
    zeros = lambda s: jnp.zeros(s, jnp.float32)
    return {
        "w_patch": nrm(ks[0], (PATCH_DIM, HIDDEN)),
        "cls": nrm(ks[1], (1, HIDDEN)),
        "pos": nrm(ks[2], (SEQ, HIDDEN)),
        "preln_g": ones((1, HIDDEN)), "preln_b": zeros((1, HIDDEN)),
        "ln1_g": ones((1, HIDDEN)), "ln1_b": zeros((1, HIDDEN)),
        "wq": nrm(ks[3], (HIDDEN, HIDDEN)), "bq": zeros((1, HIDDEN)),
        "wk": nrm(ks[4], (HIDDEN, HIDDEN)), "bk": zeros((1, HIDDEN)),
        "wv": nrm(ks[5], (HIDDEN, HIDDEN)), "bv": zeros((1, HIDDEN)),
        "wo": nrm(ks[6], (HIDDEN, HIDDEN)), "bo": zeros((1, HIDDEN)),
        "ln2_g": ones((1, HIDDEN)), "ln2_b": zeros((1, HIDDEN)),
        "w1": nrm(ks[7], (HIDDEN, MLP)), "b1": zeros((1, MLP)),
        "w2": nrm(ks[8], (MLP, HIDDEN)), "b2": zeros((1, HIDDEN)),
        "postln_g": ones((1, HIDDEN)), "postln_b": zeros((1, HIDDEN)),
        "wproj": nrm(ks[9], (HIDDEN, EMBED)),
    }


if __name__ == "__main__":
    key = jax.random.PRNGKey(0)
    pkey, ikey = jax.random.split(key)
    params = init_params(pkey)

    # One-time, load-time weight packing (hoisted out of the per-call jit path).
    wslab, vecs = pack_params(params, NUM_VIEWS)

    # TODO(synk): os.listdir / PIL decode / CLIPImageProcessor resize-normalize
    # and the pretrained CLIP checkpoint have no Pallas equivalent; inputs here
    # are preprocessed pixel tensors fed to a small synthetic CLIP-style tower.
    pixel_values = jax.random.normal(
        ikey, (NUM_VIEWS, CHANNELS, IMG, IMG), jnp.float32)

    feats = multi_view_image_features(pixel_values, wslab, vecs)
    jax.block_until_ready(feats)
    assert feats.shape == (1, NUM_VIEWS, EMBED), feats.shape
    assert feats.dtype == jnp.float32
    assert bool(jnp.all(jnp.isfinite(feats)))
    print("KERNEL_OK")
</pallas_src>

<mosaic_0001>
module attributes {stable_mosaic.version = 11 : i64} {
  func.func @clip_vision_kernel(%arg0: memref<10x192xbf16, #tpu.memory_space<vmem>>, %arg1: memref<384x128xbf16, #tpu.memory_space<vmem>>, %arg2: memref<22x128xf32, #tpu.memory_space<vmem>>, %arg3: memref<2x128xf32, #tpu.memory_space<vmem>>) attributes {dimension_semantics = [], scalar_prefetch = 0 : i64, scratch_operands = 0 : i64, tpu.core_type = #tpu.core_type<tc>} {
    %c0 = arith.constant 0 : index
    %c0_0 = arith.constant 0 : index
    %0 = vector.load %arg0[%c0, %c0_0] : memref<10x192xbf16, #tpu.memory_space<vmem>>, vector<10x192xbf16>
    %c0_1 = arith.constant 0 : index
    %c0_2 = arith.constant 0 : index
    %1 = vector.load %arg1[%c0_1, %c0_2] : memref<384x128xbf16, #tpu.memory_space<vmem>>, vector<192x32xbf16>
    %cst = arith.constant dense<0.000000e+00> : vector<10x32xf32>
    %2 = tpu.matmul %0, %1, %cst {dimension_numbers = #tpu.dot_dimension_numbers<[1], [0], [0], [1], [0, 0, 1, 1], [], []>} : vector<10x192xbf16>, vector<192x32xbf16>, vector<10x32xf32> -> vector<10x32xf32>
    %c0_3 = arith.constant 0 : index
    %c0_4 = arith.constant 0 : index
    %3 = vector.load %arg2[%c0_3, %c0_4] : memref<22x128xf32, #tpu.memory_space<vmem>>, vector<10x32xf32>
    %4 = arith.addf %2, %3 : vector<10x32xf32>
    %cst_5 = arith.constant dense<0.000000e+00> : vector<10xf32>
    %5 = vector.multi_reduction <add>, %4, %cst_5 [1] : vector<10x32xf32> to vector<10xf32>
    %6 = vector.shape_cast %5 : vector<10xf32> to vector<10x1xf32>
    %cst_6 = arith.constant 3.200000e+01 : f32
    %7 = vector.broadcast %cst_6 : f32 to vector<10x1xf32>
    %8 = arith.divf %6, %7 : vector<10x1xf32>
    %9 = vector.broadcast %8 : vector<10x1xf32> to vector<10x32xf32>
    %10 = arith.subf %4, %9 : vector<10x32xf32>
    %11 = arith.mulf %10, %10 : vector<10x32xf32>
    %cst_7 = arith.constant dense<0.000000e+00> : vector<10xf32>
    %12 = vector.multi_reduction <add>, %11, %cst_7 [1] : vector<10x32xf32> to vector<10xf32>
    %13 = vector.shape_cast %12 : vector<10xf32> to vector<10x1xf32>
    %cst_8 = arith.constant 3.200000e+01 : f32
    %14 = vector.broadcast %cst_8 : f32 to vector<10x1xf32>
    %15 = arith.divf %13, %14 : vector<10x1xf32>
    %16 = vector.broadcast %8 : vector<10x1xf32> to vector<10x32xf32>
    %17 = arith.subf %4, %16 : vector<10x32xf32>
    %cst_9 = arith.constant 9.99999974E-6 : f32
    %18 = vector.broadcast %cst_9 : f32 to vector<10x1xf32>
    %19 = arith.addf %15, %18 : vector<10x1xf32>
    %20 = math.rsqrt %19 : vector<10x1xf32>
    %21 = vector.broadcast %20 : vector<10x1xf32> to vector<10x32xf32>
    %22 = arith.mulf %17, %21 : vector<10x32xf32>
    %c10 = arith.constant 10 : index
    %c0_10 = arith.constant 0 : index
    %23 = vector.load %arg2[%c10, %c0_10] : memref<22x128xf32, #tpu.memory_space<vmem>>, vector<1x32xf32>
    %24 = vector.broadcast %23 : vector<1x32xf32> to vector<10x32xf32>
    %25 = arith.mulf %22, %24 : vector<10x32xf32>
    %c11 = arith.constant 11 : index
    %c0_11 = arith.constant 0 : index
    %26 = vector.load %arg2[%c11, %c0_11] : memref<22x128xf32, #tpu.memory_space<vmem>>, vector<1x32xf32>
    %27 = vector.broadcast %26 : vector<1x32xf32> to vector<10x32xf32>
    %28 = arith.addf %25, %27 : vector<10x32xf32>
    %cst_12 = arith.constant dense<0.000000e+00> : vector<10xf32>
    %29 = vector.multi_reduction <add>, %28, %cst_12 [1] : vector<10x32xf32> to vector<10xf32>
    %30 = vector.shape_cast %29 : vector<10xf32> to vector<10x1xf32>
    %cst_13 = arith.constant 3.200000e+01 : f32
    %31 = vector.broadcast %cst_13 : f32 to vector<10x1xf32>
    %32 = arith.divf %30, %31 : vector<10x1xf32>
    %33 = vector.broadcast %32 : vector<10x1xf32> to vector<10x32xf32>
    %34 = arith.subf %28, %33 : vector<10x32xf32>
    %35 = arith.mulf %34, %34 : vector<10x32xf32>
    %cst_14 = arith.constant dense<0.000000e+00> : vector<10xf32>
    %36 = vector.multi_reduction <add>, %35, %cst_14 [1] : vector<10x32xf32> to vector<10xf32>
    %37 = vector.shape_cast %36 : vector<10xf32> to vector<10x1xf32>
    %cst_15 = arith.constant 3.200000e+01 : f32
    %38 = vector.broadcast %cst_15 : f32 to vector<10x1xf32>
    %39 = arith.divf %37, %38 : vector<10x1xf32>
    %40 = vector.broadcast %32 : vector<10x1xf32> to vector<10x32xf32>
    %41 = arith.subf %28, %40 : vector<10x32xf32>
    %cst_16 = arith.constant 9.99999974E-6 : f32
    %42 = vector.broadcast %cst_16 : f32 to vector<10x1xf32>
    %43 = arith.addf %39, %42 : vector<10x1xf32>
    %44 = math.rsqrt %43 : vector<10x1xf32>
    %45 = vector.broadcast %44 : vector<10x1xf32> to vector<10x32xf32>
    %46 = arith.mulf %41, %45 : vector<10x32xf32>
    %c12 = arith.constant 12 : index
    %c0_17 = arith.constant 0 : index
    %47 = vector.load %arg2[%c12, %c0_17] : memref<22x128xf32, #tpu.memory_space<vmem>>, vector<1x32xf32>
    %48 = vector.broadcast %47 : vector<1x32xf32> to vector<10x32xf32>
    %49 = arith.mulf %46, %48 : vector<10x32xf32>
    %c13 = arith.constant 13 : index
    %c0_18 = arith.constant 0 : index
    %50 = vector.load %arg2[%c13, %c0_18] : memref<22x128xf32, #tpu.memory_space<vmem>>, vector<1x32xf32>
    %51 = vector.broadcast %50 : vector<1x32xf32> to vector<10x32xf32>
    %52 = arith.addf %49, %51 : vector<10x32xf32>
    %53 = arith.truncf %52 : vector<10x32xf32> to vector<10x32xbf16>
    %c192 = arith.constant 192 : index
    %c0_19 = arith.constant 0 : index
    %54 = vector.load %arg1[%c192, %c0_19] : memref<384x128xbf16, #tpu.memory_space<vmem>>, vector<32x96xbf16>
    %cst_20 = arith.constant dense<0.000000e+00> : vector<10x96xf32>
    %55 = tpu.matmul %53, %54, %cst_20 {dimension_numbers = #tpu.dot_dimension_numbers<[1], [0], [0], [1], [0, 0, 1, 1], [], []>} : vector<10x32xbf16>, vector<32x96xbf16>, vector<10x96xf32> -> vector<10x96xf32>
    %c14 = arith.constant 14 : index
    %c0_21 = arith.constant 0 : index
    %56 = vector.load %arg2[%c14, %c0_21] : memref<22x128xf32, #tpu.memory_space<vmem>>, vector<1x96xf32>
    %57 = vector.broadcast %56 : vector<1x96xf32> to vector<10x96xf32>
    %58 = arith.addf %55, %57 : vector<10x96xf32>
    %59 = vector.shape_cast %58 : vector<10x96xf32> to vector<2x5x96xf32>
    %60 = vector.extract_strided_slice %59 {offsets = [0, 0, 0], sizes = [2, 5, 16], strides = [1, 1, 1]} : vector<2x5x96xf32> to vector<2x5x16xf32>
    %61 = vector.extract_strided_slice %59 {offsets = [0, 0, 16], sizes = [2, 5, 16], strides = [1, 1, 1]} : vector<2x5x96xf32> to vector<2x5x16xf32>
    %62 = tpu.concatenate %60, %61 in 0 : vector<2x5x16xf32>, vector<2x5x16xf32> -> vector<4x5x16xf32>
    %63 = arith.truncf %62 : vector<4x5x16xf32> to vector<4x5x16xbf16>
    %64 = vector.extract_strided_slice %59 {offsets = [0, 0, 32], sizes = [2, 5, 16], strides = [1, 1, 1]} : vector<2x5x96xf32> to vector<2x5x16xf32>
    %65 = vector.extract_strided_slice %59 {offsets = [0, 0, 48], sizes = [2, 5, 16], strides = [1, 1, 1]} : vector<2x5x96xf32> to vector<2x5x16xf32>
    %66 = tpu.concatenate %64, %65 in 0 : vector<2x5x16xf32>, vector<2x5x16xf32> -> vector<4x5x16xf32>
    %67 = arith.truncf %66 : vector<4x5x16xf32> to vector<4x5x16xbf16>
    %68 = vector.extract_strided_slice %59 {offsets = [0, 0, 64], sizes = [2, 5, 16], strides = [1, 1, 1]} : vector<2x5x96xf32> to vector<2x5x16xf32>
    %69 = vector.extract_strided_slice %59 {offsets = [0, 0, 80], sizes = [2, 5, 16], strides = [1, 1, 1]} : vector<2x5x96xf32> to vector<2x5x16xf32>
    %70 = tpu.concatenate %68, %69 in 0 : vector<2x5x16xf32>, vector<2x5x16xf32> -> vector<4x5x16xf32>
    %71 = arith.truncf %70 : vector<4x5x16xf32> to vector<4x5x16xbf16>
    "tpu.trace_start"() <{level = 10 : i32, message = "bqd,bkd->bqk"}> : () -> ()
    %cst_22 = arith.constant dense<0.000000e+00> : vector<4x5x5xf32>
    %72 = tpu.matmul %63, %67, %cst_22 {dimension_numbers = #tpu.dot_dimension_numbers<[2], [2], [1], [1], [0, 0, 0, 1, 1, 1], [0], [0]>} : vector<4x5x16xbf16>, vector<4x5x16xbf16>, vector<4x5x5xf32> -> vector<4x5x5xf32>
    "tpu.trace_stop"() : () -> ()
    %cst_23 = arith.constant dense<0xFF800000> : vector<4x5xf32>
    %73 = vector.multi_reduction <maximumf>, %72, %cst_23 [2] : vector<4x5x5xf32> to vector<4x5xf32>
    %74 = vector.shape_cast %73 : vector<4x5xf32> to vector<4x5x1xf32>
    %75 = vector.broadcast %74 : vector<4x5x1xf32> to vector<4x5x5xf32>
    %76 = arith.subf %72, %75 : vector<4x5x5xf32>
    %77 = math.exp %76 : vector<4x5x5xf32>
    %cst_24 = arith.constant dense<0.000000e+00> : vector<4x5xf32>
    %78 = vector.multi_reduction <add>, %77, %cst_24 [2] : vector<4x5x5xf32> to vector<4x5xf32>
    %79 = vector.shape_cast %78 : vector<4x5xf32> to vector<4x5x1xf32>
    %80 = tpu.reciprocal %79 {approx = true} : vector<4x5x1xf32> -> vector<4x5x1xf32>
    %81 = vector.broadcast %80 : vector<4x5x1xf32> to vector<4x5x5xf32>
    %82 = arith.mulf %77, %81 : vector<4x5x5xf32>
    %83 = arith.truncf %82 : vector<4x5x5xf32> to vector<4x5x5xbf16>
    "tpu.trace_start"() <{level = 10 : i32, message = "bqk,bkd->bqd"}> : () -> ()
    %cst_25 = arith.constant dense<0.000000e+00> : vector<4x5x16xf32>
    %84 = tpu.matmul %83, %71, %cst_25 {dimension_numbers = #tpu.dot_dimension_numbers<[2], [1], [1], [2], [0, 0, 0, 1, 1, 2], [0], [0]>} : vector<4x5x5xbf16>, vector<4x5x16xbf16>, vector<4x5x16xf32> -> vector<4x5x16xf32>
    "tpu.trace_stop"() : () -> ()
    %85 = vector.extract_strided_slice %84 {offsets = [0, 0, 0], sizes = [2, 5, 16], strides = [1, 1, 1]} : vector<4x5x16xf32> to vector<2x5x16xf32>
    %86 = vector.extract_strided_slice %84 {offsets = [2, 0, 0], sizes = [2, 5, 16], strides = [1, 1, 1]} : vector<4x5x16xf32> to vector<2x5x16xf32>
    %87 = tpu.concatenate %85, %86 in 2 : vector<2x5x16xf32>, vector<2x5x16xf32> -> vector<2x5x32xf32>
    %88 = vector.shape_cast %87 : vector<2x5x32xf32> to vector<10x32xf32>
    %89 = arith.truncf %88 : vector<10x32xf32> to vector<10x32xbf16>
    %c224 = arith.constant 224 : index
    %c0_26 = arith.constant 0 : index
    %90 = vector.load %arg1[%c224, %c0_26] : memref<384x128xbf16, #tpu.memory_space<vmem>>, vector<32x32xbf16>
    %cst_27 = arith.constant dense<0.000000e+00> : vector<10x32xf32>
    %91 = tpu.matmul %89, %90, %cst_27 {dimension_numbers = #tpu.dot_dimension_numbers<[1], [0], [0], [1], [0, 0, 1, 1], [], []>} : vector<10x32xbf16>, vector<32x32xbf16>, vector<10x32xf32> -> vector<10x32xf32>
    %c15 = arith.constant 15 : index
    %c0_28 = arith.constant 0 : index
    %92 = vector.load %arg2[%c15, %c0_28] : memref<22x128xf32, #tpu.memory_space<vmem>>, vector<1x32xf32>
    %93 = vector.broadcast %92 : vector<1x32xf32> to vector<10x32xf32>
    %94 = arith.addf %91, %93 : vector<10x32xf32>
    %95 = arith.addf %28, %94 : vector<10x32xf32>
    %cst_29 = arith.constant dense<0.000000e+00> : vector<10xf32>
    %96 = vector.multi_reduction <add>, %95, %cst_29 [1] : vector<10x32xf32> to vector<10xf32>
    %97 = vector.shape_cast %96 : vector<10xf32> to vector<10x1xf32>
    %cst_30 = arith.constant 3.200000e+01 : f32
    %98 = vector.broadcast %cst_30 : f32 to vector<10x1xf32>
    %99 = arith.divf %97, %98 : vector<10x1xf32>
    %100 = vector.broadcast %99 : vector<10x1xf32> to vector<10x32xf32>
    %101 = arith.subf %95, %100 : vector<10x32xf32>
    %102 = arith.mulf %101, %101 : vector<10x32xf32>
    %cst_31 = arith.constant dense<0.000000e+00> : vector<10xf32>
    %103 = vector.multi_reduction <add>, %102, %cst_31 [1] : vector<10x32xf32> to vector<10xf32>
    %104 = vector.shape_cast %103 : vector<10xf32> to vector<10x1xf32>
    %cst_32 = arith.constant 3.200000e+01 : f32
    %105 = vector.broadcast %cst_32 : f32 to vector<10x1xf32>
    %106 = arith.divf %104, %105 : vector<10x1xf32>
    %107 = vector.broadcast %99 : vector<10x1xf32> to vector<10x32xf32>
    %108 = arith.subf %95, %107 : vector<10x32xf32>
    %cst_33 = arith.constant 9.99999974E-6 : f32
    %109 = vector.broadcast %cst_33 : f32 to vector<10x1xf32>
    %110 = arith.addf %106, %109 : vector<10x1xf32>
    %111 = math.rsqrt %110 : vector<10x1xf32>
    %112 = vector.broadcast %111 : vector<10x1xf32> to vector<10x32xf32>
    %113 = arith.mulf %108, %112 : vector<10x32xf32>
    %c16 = arith.constant 16 : index
    %c0_34 = arith.constant 0 : index
    %114 = vector.load %arg2[%c16, %c0_34] : memref<22x128xf32, #tpu.memory_space<vmem>>, vector<1x32xf32>
    %115 = vector.broadcast %114 : vector<1x32xf32> to vector<10x32xf32>
    %116 = arith.mulf %113, %115 : vector<10x32xf32>
    %c17 = arith.constant 17 : index
    %c0_35 = arith.constant 0 : index
    %117 = vector.load %arg2[%c17, %c0_35] : memref<22x128xf32, #tpu.memory_space<vmem>>, vector<1x32xf32>
    %118 = vector.broadcast %117 : vector<1x32xf32> to vector<10x32xf32>
    %119 = arith.addf %116, %118 : vector<10x32xf32>
    %120 = arith.truncf %119 : vector<10x32xf32> to vector<10x32xbf16>
    %c256 = arith.constant 256 : index
    %c0_36 = arith.constant 0 : index
    %121 = vector.load %arg1[%c256, %c0_36] : memref<384x128xbf16, #tpu.memory_space<vmem>>, vector<32x64xbf16>
    %cst_37 = arith.constant dense<0.000000e+00> : vector<10x64xf32>
    %122 = tpu.matmul %120, %121, %cst_37 {dimension_numbers = #tpu.dot_dimension_numbers<[1], [0], [0], [1], [0, 0, 1, 1], [], []>} : vector<10x32xbf16>, vector<32x64xbf16>, vector<10x64xf32> -> vector<10x64xf32>
    %c18 = arith.constant 18 : index
    %c0_38 = arith.constant 0 : index
    %123 = vector.load %arg2[%c18, %c0_38] : memref<22x128xf32, #tpu.memory_space<vmem>>, vector<1x64xf32>
    %124 = vector.broadcast %123 : vector<1x64xf32> to vector<10x64xf32>
    %125 = arith.addf %122, %124 : vector<10x64xf32>
    %cst_39 = arith.constant 1.702000e+00 : f32
    %126 = vector.broadcast %cst_39 : f32 to vector<10x64xf32>
    %127 = arith.mulf %126, %125 : vector<10x64xf32>
    %128 = arith.negf %127 : vector<10x64xf32>
    %129 = math.exp %128 : vector<10x64xf32>
    %cst_40 = arith.constant 1.000000e+00 : f32
    %130 = vector.broadcast %cst_40 : f32 to vector<10x64xf32>
    %131 = arith.addf %130, %129 : vector<10x64xf32>
    %132 = arith.divf %130, %131 : vector<10x64xf32>
    %133 = arith.mulf %125, %132 : vector<10x64xf32>
    %134 = arith.truncf %133 : vector<10x64xf32> to vector<10x64xbf16>
    %c288 = arith.constant 288 : index
    %c0_41 = arith.constant 0 : index
    %135 = vector.load %arg1[%c288, %c0_41] : memref<384x128xbf16, #tpu.memory_space<vmem>>, vector<64x32xbf16>
    %cst_42 = arith.constant dense<0.000000e+00> : vector<10x32xf32>
    %136 = tpu.matmul %134, %135, %cst_42 {dimension_numbers = #tpu.dot_dimension_numbers<[1], [0], [0], [1], [0, 0, 1, 1], [], []>} : vector<10x64xbf16>, vector<64x32xbf16>, vector<10x32xf32> -> vector<10x32xf32>
    %137 = arith.addf %95, %136 : vector<10x32xf32>
    %c19 = arith.constant 19 : index
    %c0_43 = arith.constant 0 : index
    %138 = vector.load %arg2[%c19, %c0_43] : memref<22x128xf32, #tpu.memory_space<vmem>>, vector<1x32xf32>
    %139 = vector.broadcast %138 : vector<1x32xf32> to vector<10x32xf32>
    %140 = arith.addf %137, %139 : vector<10x32xf32>
    %141 = vector.shape_cast %140 : vector<10x32xf32> to vector<2x5x32xf32>
    %142 = vector.extract_strided_slice %141 {offsets = [0, 0, 0], sizes = [2, 1, 32], strides = [1, 1, 1]} : vector<2x5x32xf32> to vector<2x1x32xf32>
    %143 = vector.shape_cast %142 : vector<2x1x32xf32> to vector<2x32xf32>
    %cst_44 = arith.constant dense<0.000000e+00> : vector<2xf32>
    %144 = vector.multi_reduction <add>, %143, %cst_44 [1] : vector<2x32xf32> to vector<2xf32>
    %145 = vector.shape_cast %144 : vector<2xf32> to vector<2x1xf32>
    %cst_45 = arith.constant 3.200000e+01 : f32
    %146 = vector.broadcast %cst_45 : f32 to vector<2x1xf32>
    %147 = arith.divf %145, %146 : vector<2x1xf32>
    %148 = vector.broadcast %147 : vector<2x1xf32> to vector<2x32xf32>
    %149 = arith.subf %143, %148 : vector<2x32xf32>
    %150 = arith.mulf %149, %149 : vector<2x32xf32>
    %cst_46 = arith.constant dense<0.000000e+00> : vector<2xf32>
    %151 = vector.multi_reduction <add>, %150, %cst_46 [1] : vector<2x32xf32> to vector<2xf32>
    %152 = vector.shape_cast %151 : vector<2xf32> to vector<2x1xf32>
    %cst_47 = arith.constant 3.200000e+01 : f32
    %153 = vector.broadcast %cst_47 : f32 to vector<2x1xf32>
    %154 = arith.divf %152, %153 : vector<2x1xf32>
    %155 = vector.broadcast %147 : vector<2x1xf32> to vector<2x32xf32>
    %156 = arith.subf %143, %155 : vector<2x32xf32>
    %cst_48 = arith.constant 9.99999974E-6 : f32
    %157 = vector.broadcast %cst_48 : f32 to vector<2x1xf32>
    %158 = arith.addf %154, %157 : vector<2x1xf32>
    %159 = math.rsqrt %158 : vector<2x1xf32>
    %160 = vector.broadcast %159 : vector<2x1xf32> to vector<2x32xf32>
    %161 = arith.mulf %156, %160 : vector<2x32xf32>
    %c20 = arith.constant 20 : index
    %c0_49 = arith.constant 0 : index
    %162 = vector.load %arg2[%c20, %c0_49] : memref<22x128xf32, #tpu.memory_space<vmem>>, vector<1x32xf32>
    %163 = vector.broadcast %162 : vector<1x32xf32> to vector<2x32xf32>
    %164 = arith.mulf %161, %163 : vector<2x32xf32>
    %c21 = arith.constant 21 : index
    %c0_50 = arith.constant 0 : index
    %165 = vector.load %arg2[%c21, %c0_50] : memref<22x128xf32, #tpu.memory_space<vmem>>, vector<1x32xf32>
    %166 = vector.broadcast %165 : vector<1x32xf32> to vector<2x32xf32>
    %167 = arith.addf %164, %166 : vector<2x32xf32>
    %168 = arith.truncf %167 : vector<2x32xf32> to vector<2x32xbf16>
    %c352 = arith.constant 352 : index
    %c0_51 = arith.constant 0 : index
    %169 = vector.load %arg1[%c352, %c0_51] : memref<384x128xbf16, #tpu.memory_space<vmem>>, vector<32x128xbf16>
    %cst_52 = arith.constant dense<0.000000e+00> : vector<2x128xf32>
    %170 = tpu.matmul %168, %169, %cst_52 {dimension_numbers = #tpu.dot_dimension_numbers<[1], [0], [0], [1], [0, 0, 1, 1], [], []>} : vector<2x32xbf16>, vector<32x128xbf16>, vector<2x128xf32> -> vector<2x128xf32>
    %c0_53 = arith.constant 0 : index
    %c0_54 = arith.constant 0 : index
    %171 = vector.load %arg3[%c0_53, %c0_54] : memref<2x128xf32, #tpu.memory_space<vmem>>, vector<2x128xf32>
    tpu.vector_store %arg3[%c0_53, %c0_54], %170 {strides = array<i32>} : memref<2x128xf32, #tpu.memory_space<vmem>>, vector<2x128xf32>,
    return
  }
}

</mosaic_0001>

<bundles_post_ra>
// kernel: multi_view_image_features.1
= control target key start
LH: loop header
LB: loop body
LE: loop exit
PB: predicated region body
PF: predicated region fallthrough
CT: control target
= control target key end

     0   :  { %v1945_v0 = vmov 0   ;;  %vm124_vm0 = vcmask 523264   ;;  %vm169_vm1 = vcmask 261120   ;;  %vm173_vm2 = vcmask 254976   ;;  %s1949_s30 = smov 112   ;;  %s1950_s4 = smov 96   ;;  %s2302_s1 = inlined_call_operand.vmem [shape: bf16[384,128], index: 1, kind: input, shape index: {}]   ;;  %s2303_s0 = inlined_call_operand.vmem [shape: bf16[10,192], index: 0, kind: input, shape index: {}]   ;;  %s2304_s2 = inlined_call_operand.vmem [shape: f32[22,128], index: 2, kind: input, shape index: {}]   ;;  %s2305_s3 = inlined_call_operand.vmem [shape: f32[2,128], index: 3, kind: output, shape index: {}]  }
   0x1   :  { %128 = vmatprep.subr.bf16.mxu0 %v1945_v0  ;;  %v1880_v1 = vld [vmem:[%s2302_s1 + $0x38] sm:$0xff]   ;;  %v1881_v2 = vld [vmem:[%s2302_s1 + $0x30] sm:$0xff]   ;;  %v1882_v3 = vld [vmem:[%s2302_s1 + $0x28] sm:$0xff]   ;;  %vm1947_vm3 = vmmov 0   ;;  %vm578_vm4 = vcmask 130048   ;;  %vm772_vm5 = vcmask 36864  }
   0x2   :  { %129 = vmatpush1.bf16.msra.mxu0 %v1880_v1  ;;  %v1883_v4 = vld [vmem:[%s2302_s1 + $0x20] sm:$0xff]   ;;  %v1884_v5 = vld [vmem:[%s2302_s1 + $0x18] sm:$0xff]   ;;  %v1885_v7 = vld [vmem:[%s2302_s1 + $0x10] sm:$0xff]   ;;  %s1951_s5 = smov 64   ;;  %vm827_vm6 = vcmask 1041408   ;;  %vm828_vm7 = vcmask 1042432  }
   0x3   :  { %130 = vmatprep.subr.bf16.mxu0 %v1945_v0  ;;  %v1894_v6 = vld [vmem:[%s2303_s0 + $0x4] ss:$8 sps:$4 sm:$0x1f]   ;;  %v1888_v10 = vld [vmem:[%s2302_s1 + $0x58] sm:$0xff]   ;;  %v1889_v11 = vld [vmem:[%s2302_s1 + $0x50] sm:$0xff]   ;;  %vm823_vm8 = vcmask 39936  }
   0x4   :  { %1704 = vmatprep.mubr.msk.bf16.mxu0 %vm124_vm0, %v1894_v6  ;;  %v1886_v8 = vld [vmem:[%s2302_s1 + $0x8] sm:$0xff]   ;;  %v1887_v9 = vld [vmem:[%s2302_s1] sm:$0xff]   ;;  %s1953_s6 = smov 16   ;;  %vm1627_vm9 = vcmask 1041409  }
   0x5   :  { %v1890_v12 = vld [vmem:[%s2302_s1 + $0x48] sm:$0xff]   ;;  %v1891_v13 = vld [vmem:[%s2302_s1 + $0x40] sm:$0xff]  }
   0x6   :  { %131 = vmatpush1.bf16.msra.mxu0 %v1881_v2  ;;  %v1892_v14 = vld [vmem:[%s2303_s0] ss:$8 sps:$4 sm:$0x1f]   ;;  %v1705_v42 = vld [vmem:[%s2304_s2 + $0xa] ss:$0 sm:$0xff] }
   0x7   :  { %132 = vmatprep.subr.bf16.mxu0 %v1945_v0  ;;  %v41_v15 = vld [vmem:[%s2304_s2] sm:$0xff]  ;;  %v42_v19 = vld [vmem:[%s2304_s2 + $0x8] sm:$0x3]  ;;  %v1706_v44 = vld [vmem:[%s2304_s2 + $0xb] ss:$0 sm:$0xff] }
   0x8   :  { %v1895_v63 = vld [vmem:[%s2302_s1 + $0x68] sm:$0xff]   ;;  %v1896_v1 = vld [vmem:[%s2302_s1 + $0x60] sm:$0xff]  }
   0xa   :  { %133 = vmatpush1.bf16.msra.mxu0 %v1882_v3 }
   0xb   :  { %134 = vmatprep.subr.bf16.mxu0 %v1945_v0 }
   0xe   :  { %135 = vmatpush1.bf16.msra.mxu0 %v1883_v4 }
   0xf   :  { %136 = vmatprep.subr.bf16.mxu0 %v1945_v0 }
  0x12   :  { %137 = vmatpush1.bf16.msra.mxu0 %v1884_v5 }
  0x13   :  { %138 = vmatprep.subr.bf16.mxu0 %v1945_v0 }
  0x16   :  { %139 = vmatpush1.bf16.msra.mxu0 %v1885_v7 }
  0x17   :  { %140 = vmatprep.subr.bf16.mxu0 %v1945_v0 }
  0x1a   :  { %141 = vmatpush1.bf16.msra.mxu0 %v1886_v8 }
  0x1b   :  { %142 = vmatprep.subr.bf16.mxu0 %v1945_v0 }
  0x1e   :  { %143 = vmatpush1.bf16.msra.mxu0 %v1887_v9 }
  0x1f   :  { %152 = vmatprep.subr.bf16.mxu0 %v1945_v0 }
  0x22   :  { %153 = vmatpush2.bf16.msra.mxu0 %v1888_v10  ;;  %v1707_v10 = vld [vmem:[%s2304_s2 + $0xc] ss:$0 sm:$0xff] }
  0x23   :  { %154 = vmatprep.subr.bf16.mxu0 %v1945_v0 }
  0x26   :  { %155 = vmatpush2.bf16.msra.mxu0 %v1889_v11 }
  0x27   :  { %156 = vmatprep.subr.bf16.mxu0 %v1945_v0 }
  0x2a   :  { %157 = vmatpush2.bf16.msra.mxu0 %v1890_v12 }
  0x2b   :  { %158 = vmatprep.subr.bf16.mxu0 %v1945_v0  ;;  %v1946_v0 = vmov 0.0  }
  0x2c   :  { %1779 = vmatprep.subr.bf16.mxu1 %v1946_v0  ;;  %1783 = vmatprep.mubr.msk.bf16.mxu1 %vm1947_vm3, %v1946_v0 }
  0x2d   :  { %1780 = vmatpush3.bf16.msra.mxu1 %v1895_v63 }
  0x2e   :  { %159 = vmatpush2.bf16.msra.mxu0 %v1891_v13  ;;  %1781 = vmatprep.subr.bf16.mxu1 %v1946_v0 }
  0x2f   :  { %1817 = vmatprep.subr.bf16.mxu0 %v1946_v0 }
  0x31   :  { %161 = vmatmul.mubr.bf16.vlgmr.msra.gmra.mxu0 %v1892_v14  ;;  %1782 = vmatpush3.bf16.msra.mxu1 %v1896_v1  ;;  %v1708_v14 = vld [vmem:[%s2304_s2 + $0xd] ss:$0 sm:$0xff] }
  0x32   :  { %1819 = vmatprep.mubr.msk.bf16.mxu0 %vm1947_vm3, %v1946_v0  ;;  %1787 = vmatprep.subr.bf16.mxu1 %v1946_v0 }
  0xf1   :  { %v162_v16 = vpop.f32.mrf.mxu0 }
  0xf2   :  { %v163_v17 = vadd.f32 %v162_v16, %v41_v15 }
  0xf3   :  { %v164_v18 = vpop.f32.mrf.mxu0 }
  0xf4   :  { %v170_v20 = vsel %vm169_vm1, %v163_v17, 0.0 }
  0xf5   :  { %v165_v21 = vpop.f32.mrf.mxu0  ;;  %171 = vadd.xlane.f32.xlu0 %v170_v20 }
  0xf6   :  { %v166_v22 = vadd.f32 %v165_v21, %v42_v19  ;;  %v1948_v19 = vmov 1966171168   ;;  %v324_v21 = vlaneseq }
  0xf7   :  { %v167_v23 = vpop.f32.mrf.mxu0  ;;  %v322_v20 = vunpack.c.l.s4 %v1948_v19 }
  0xf8   :  { %v174_v24 = vsel %vm173_vm2, %v166_v22, 0.0  ;;  %v2068_v23 = vshrl.u32 %v324_v21, 7 }
  0xf9   :  { %175 = vadd.xlane.f32.xlu0 %v174_v24  ;;  %v1709_v24 = vld [vmem:[%s2304_s2 + $0xe] ss:$0 sm:$0xff] }
 0x17e   :  { %v172_v25 = vpop.xlane.xlu0 %171 }
 0x17f   :  { %v178_v26 = vmul.f32 0.03125, %v172_v25 }
 0x181   :  { %v180_v27 = vsub.f32 %v163_v17, %v178_v26 }
 0x182   :  { %v176_v28 = vpop.xlane.xlu0 %175 }
 0x183   :  { %v179_v29 = vmul.f32 0.03125, %v176_v28  ;;  %v182_v30 = vmul.f32 %v180_v27, %v180_v27 }
 0x185   :  { %v181_v31 = vsub.f32 %v166_v22, %v179_v29  ;;  %v184_v32 = vsel %vm169_vm1, %v182_v30, 0.0  ;;  %v323_v22 = vunpack.c.0.s8 %v322_v20 }
 0x186   :  { %185 = vadd.xlane.f32.xlu1 %v184_v32 }
 0x187   :  { %v183_v33 = vmul.f32 %v181_v31, %v181_v31  ;;  %v2074_v25 = vsub.s32 %v323_v22, %v2068_v23 }
 0x189   :  { %v187_v34 = vsel %vm173_vm2, %v183_v33, 0.0 }
 0x18a   :  { %188 = vadd.xlane.f32.xlu1 %v187_v34 }
 0x20f   :  { %v186_v35 = vpop.xlane.xlu1 %185 }
 0x210   :  { %v190_v36 = vmul.f32 0.03125, %v186_v35 }
 0x212   :  { %v192_v37 = vadd.f32 1e-05, %v190_v36 }
 0x213   :  { %v189_v38 = vpop.xlane.xlu1 %188 }
 0x214   :  { %1907 = vrsqrt.f32 %v192_v37  ;;  %v191_v39 = vmul.f32 0.03125, %v189_v38 }
 0x216   :  { %v193_v40 = vadd.f32 1e-05, %v191_v39 }
 0x218   :  { %1909 = vrsqrt.f32 %v193_v40 }
 0x221   :  { %v1908_v41 = vpop.eup %1907 }
 0x222   :  { %v196_v43 = vmul.f32 %v1908_v41, %v180_v27 }
 0x224   :  { %v203_v45 = vmul.f32 %v1705_v42, %v196_v43 }
 0x225   :  { %v1910_v46 = vpop.eup %1909 }
 0x226   :  { %v2033_v47 = vadd.f32 %v1706_v44, %v203_v45  ;;  %v197_v48 = vmul.f32 %v1910_v46, %v181_v31 }
 0x228   :  { %v212_v49 = vsel %vm169_vm1, %v2033_v47, 0.0  ;;  %v204_v50 = vmul.f32 %v1705_v42, %v197_v48 }
 0x229   :  { %213 = vadd.xlane.f32.xlu0 %v212_v49 }
 0x22a   :  { %v2037_v51 = vadd.f32 %v1706_v44, %v204_v50 }
 0x22c   :  { %v215_v52 = vsel %vm173_vm2, %v2037_v51, 0.0 }
 0x22d   :  { %216 = vadd.xlane.f32.xlu1 %v215_v52 }
 0x2b2   :  { %v214_v53 = vpop.xlane.xlu0 %213 }
 0x2b3   :  { %v218_v54 = vmul.f32 0.03125, %v214_v53 }
 0x2b5   :  { %v220_v55 = vsub.f32 %v2033_v47, %v218_v54 }
 0x2b6   :  { %v217_v56 = vpop.xlane.xlu1 %216 }
 0x2b7   :  { %v219_v57 = vmul.f32 0.03125, %v217_v56  ;;  %v222_v58 = vmul.f32 %v220_v55, %v220_v55 }
 0x2b9   :  { %v221_v59 = vsub.f32 %v2037_v51, %v219_v57  ;;  %v224_v60 = vsel %vm169_vm1, %v222_v58, 0.0 }
 0x2ba   :  { %225 = vadd.xlane.f32.xlu0 %v224_v60 }
 0x2bb   :  { %v223_v61 = vmul.f32 %v221_v59, %v221_v59 }
 0x2bd   :  { %v227_v62 = vsel %vm173_vm2, %v223_v61, 0.0 }
 0x2be   :  { %228 = vadd.xlane.f32.xlu1 %v227_v62 }
 0x343   :  { %v226_v2 = vpop.xlane.xlu0 %225 }
 0x344   :  { %v230_v3 = vmul.f32 0.03125, %v226_v2 }
 0x346   :  { %v232_v4 = vadd.f32 1e-05, %v230_v3 }
 0x347   :  { %v229_v5 = vpop.xlane.xlu1 %228 }
 0x348   :  { %1911 = vrsqrt.f32 %v232_v4  ;;  %v231_v6 = vmul.f32 0.03125, %v229_v5 }
 0x34a   :  { %v233_v7 = vadd.f32 1e-05, %v231_v6 }
 0x34c   :  { %1913 = vrsqrt.f32 %v233_v7 }
 0x355   :  { %v1912_v8 = vpop.eup %1911 }
 0x356   :  { %v236_v9 = vmul.f32 %v1912_v8, %v220_v55 }
 0x358   :  { %v243_v13 = vmul.f32 %v1707_v10, %v236_v9 }
 0x359   :  { %v1914_v11 = vpop.eup %1913 }
 0x35a   :  { %v237_v12 = vmul.f32 %v1914_v11, %v221_v59  ;;  %v250_v16 = vadd.f32 %v1708_v14, %v243_v13 }
 0x35c   :  { %v244_v15 = vmul.f32 %v1707_v10, %v237_v12 }
 0x35e   :  { %v251_v17 = vadd.f32 %v1708_v14, %v244_v15 }
 0x360   :  { %v252_v18 = vpack.c.bf16 %v251_v17, %v250_v16 }
 0x362   :  { %1784 = vmatmul.mubr.msk.bf16.vlgmr.msra.gmra.mxu1 %vm169_vm1, %v252_v18 }
 0x363   :  { %1789 = vmatprep.mubr.msk.bf16.mxu1 %vm1947_vm3, %v1946_v0 }
 0x422   :  { %v311_v26 = vpop.f32.mrf.mxu1 }
 0x423   :  { %v312_v27 = vadd.f32 %v1709_v24, %v311_v26 }
 0x424   :  { %v1785_v28 = vpop.f32.mrf.mxu1 }
 0x425   :  { %v320_v29 = vcombine.high %v312_v27, %v312_v27  ;;  %v327_v30 = vrot.slane %v312_v27, %v2074_v25 }
 0x426   :  { %v314_v31 = vpop.f32.mrf.mxu1 }
 0x427   :  { %v334_v32 = vrot.slane %v320_v29, %v2074_v25  ;;  %v335_v33 = vcombine.high %v327_v30, %v327_v30  ;;  %v343_v34 = vrot.slane %v327_v30, %v2074_v25  ;;  %v315_v35 = vadd.f32 %v1709_v24, %v314_v31 }
 0x428   :  { %v1786_v36 = vpop.f32.mrf.mxu1 }
 0x429   :  { %v357_v37 = vrot.slane %v335_v33, %v2074_v25  ;;  %391 = vrot.lane.b32.xlu0 %v343_v34, %s1949_s30  ;;  %v350_v38 = vrot.slane %v334_v32, %v2074_v25  ;;  %v336_v39 = vcombine.high %v334_v32, %v334_v32  ;;  %v375_v40 = vrot.slane %v315_v35, %v2074_v25 }
 0x42a   :  { %v365_v45 = vcombine.high %v343_v34, %v343_v34 }
 0x42b   :  { %393 = vrot.lane.b32.xlu1 %v357_v37, %s1949_s30  ;;  %v366_v41 = vcombine.high %v350_v38, %v350_v38  ;;  %v364_v42 = vrot.slane %v336_v39, %v2074_v25  ;;  %v411_v43 = vcombine.low %v343_v34, %v357_v37  ;;  %v1713_v44 = vcombine.high %v343_v34, %v357_v37 }
 0x42c   :  { %v433_v49 = vrot.slane %v350_v38, %v2074_v25  ;;  %v376_v50 = vcombine.high %v375_v40, %v375_v40  ;;  %v383_v52 = vrot.slane %v375_v40, %v2074_v25  ;;  %v367_v56 = vcombine.high %v357_v37, %v357_v37 }
 0x42d   :  { %399 = vrot.lane.b32.xlu0 %v350_v38, %s1949_s30  ;;  %v419_v46 = vrot.slane %v411_v43, %v2074_v25  ;;  %v426_v48 = vrot.slane %v1713_v44, %v2074_v25  ;;  %v450_v53 = vcombine.low %v364_v42, %v366_v41  ;;  %v368_v54 = vcombine.high %v364_v42, %v364_v42 }
 0x42e   :  { %v448_v59 = vrot.slane %v433_v49, %v2074_v25  ;;  %v390_v61 = vrot.slane %v376_v50, %v2074_v25 }
 0x42f   :  { %395 = vrot.lane.b32.xlu1 %v365_v45, %s1949_s30  ;;  %v434_v55 = vcombine.low %v419_v46, %v426_v48  ;;  %v451_v57 = vcombine.low %v368_v54, %v383_v52  ;;  %v458_v62 = vrot.slane %v450_v53, %v2074_v25 }
 0x430   :  { %v472_v3 = vrot.slane %v390_v61, %v2074_v25 }
 0x431   :  { %403 = vrot.lane.b32.xlu0 %v366_v41, %s1949_s30  ;;  %v441_v58 = vrot.slane %v434_v55, %v2074_v25  ;;  %v465_v60 = vrot.slane %v451_v57, %v2074_v25 }
 0x432   :  { %v487_v5 = vrot.slane %v472_v3, %v2074_v25 }
 0x433   :  { %397 = vrot.lane.b32.xlu1 %v367_v56, %s1949_s30  ;;  %v449_v63 = vcombine.low %v441_v58, %v448_v59  ;;  %v473_v1 = vcombine.low %v458_v62, %v465_v60 }
 0x435   :  { %407 = vrot.lane.b32.xlu0 %v383_v52, %s1949_s30  ;;  %v2100_v2 = vpack.c.bf16 %v449_v63, %v449_v63  ;;  %v480_v4 = vrot.slane %v473_v1, %v2074_v25 }
 0x437   :  { %401 = vrot.lane.b32.xlu1 %v364_v42, %s1949_s30  ;;  %v488_v6 = vcombine.low %v480_v4, %v487_v5 }
 0x439   :  { %576 = vrot.lane.b32.xlu0 %v2100_v2, %s1950_s4  ;;  %v2109_v7 = vpack.c.bf16 %v488_v6, %v488_v6 }
 0x43b   :  { %405 = vrot.lane.b32.xlu1 %v368_v54, %s1949_s30 }
 0x43f   :  { %409 = vrot.lane.b32.xlu1 %v390_v61, %s1949_s30 }
 0x443   :  { %626 = vrot.lane.b32.xlu1 %v2109_v7, %s1950_s4 }
 0x49b   :  { %v392_v8 = vpop.permute.xlu0 %391 }
 0x49d   :  { %v394_v9 = vpop.permute.xlu1 %393 }
 0x49e   :  { %v489_v13 = vcombine.low %v392_v8, %v394_v9 }
 0x49f   :  { %v400_v10 = vpop.permute.xlu0 %399 }
 0x4a0   :  { %v497_v17 = vrot.slane %v489_v13, %v2074_v25  ;;  %v511_v18 = vrot.slane %v400_v10, %v2074_v25 }
 0x4a1   :  { %v396_v11 = vpop.permute.xlu1 %395 }
 0x4a2   :  { %v526_v24 = vrot.slane %v511_v18, %v2074_v25 }
 0x4a3   :  { %v404_v12 = vpop.permute.xlu0 %403 }
 0x4a5   :  { %v398_v14 = vpop.permute.xlu1 %397 }
 0x4a6   :  { %v490_v15 = vcombine.low %v396_v11, %v398_v14 }
 0x4a7   :  { %v408_v16 = vpop.permute.xlu0 %407 }
 0x4a8   :  { %v504_v19 = vrot.slane %v490_v15, %v2074_v25 }
 0x4a9   :  { %v402_v20 = vpop.permute.xlu1 %401 }
 0x4aa   :  { %v512_v21 = vcombine.low %v497_v17, %v504_v19  ;;  %v528_v26 = vcombine.low %v402_v20, %v404_v12 }
 0x4ab   :  { %v577_v22 = vpop.permute.xlu0 %576 }
 0x4ac   :  { %v583_v27 = vsel %vm578_vm4, %v577_v22, 0  ;;  %v519_v28 = vrot.slane %v512_v21, %v2074_v25  ;;  %v536_v32 = vrot.slane %v528_v26, %v2074_v25 }
 0x4ad   :  { %v406_v29 = vpop.permute.xlu1 %405  ;;  %1788 = vmatpush3.bf16.xpose.msra.mxu1 %v583_v27 }
 0x4ae   :  { %v529_v30 = vcombine.low %v406_v29, %v408_v16  ;;  %v527_v31 = vcombine.low %v519_v28, %v526_v24  ;;  %1793 = vmatprep.subr.bf16.mxu1 %v1946_v0 }
 0x4b0   :  { %v543_v33 = vrot.slane %v529_v30, %v2074_v25  ;;  %v2122_v34 = vpack.c.bf16 %v527_v31, %v527_v31 }
 0x4b1   :  { %v410_v35 = vpop.permute.xlu1 %409 }
 0x4b2   :  { %v551_v36 = vcombine.low %v536_v32, %v543_v33  ;;  %v550_v37 = vrot.slane %v410_v35, %v2074_v25  ;;  %675 = vrot.lane.b32.xlu0 %v2122_v34, %s1950_s4 }
 0x4b4   :  { %v565_v38 = vrot.slane %v550_v37, %v2074_v25  ;;  %1790 = vmatmul.mubr.msk.bf16.vlgmr.msra.gmra.mxu1 %vm578_vm4, %v2100_v2  ;;  %v558_v39 = vrot.slane %v551_v36, %v2074_v25 }
 0x4b5   :  { %v627_v40 = vpop.permute.xlu1 %626  ;;  %1795 = vmatprep.mubr.msk.bf16.mxu1 %vm1947_vm3, %v1946_v0 }
 0x4b6   :  { %v632_v41 = vsel %vm578_vm4, %v627_v40, 0  ;;  %v566_v42 = vcombine.low %v558_v39, %v565_v38 }
 0x4b7   :  { %1794 = vmatpush3.bf16.xpose.msra.mxu1 %v632_v41 }
 0x4b8   :  { %v2134_v43 = vpack.c.bf16 %v566_v42, %v566_v42  ;;  %1799 = vmatprep.subr.bf16.mxu1 %v1946_v0 }
 0x4ba   :  { %724 = vrot.lane.b32.xlu1 %v2134_v43, %s1950_s4 }
 0x4be   :  { %1796 = vmatmul.mubr.msk.bf16.vlgmr.msra.gmra.mxu1 %vm578_vm4, %v2109_v7 }
 0x4bf   :  { %1801 = vmatprep.mubr.msk.bf16.mxu1 %vm1947_vm3, %v1946_v0 }
 0x524   :  { %v676_v44 = vpop.permute.xlu0 %675 }
 0x525   :  { %v681_v45 = vsel %vm578_vm4, %v676_v44, 0 }
 0x526   :  { %1800 = vmatpush3.bf16.xpose.msra.mxu1 %v681_v45 }
 0x527   :  { %1805 = vmatprep.subr.bf16.mxu1 %v1946_v0 }
 0x52c   :  { %v725_v46 = vpop.permute.xlu1 %724 }
 0x52d   :  { %v730_v48 = vsel %vm578_vm4, %v725_v46, 0  ;;  %1802 = vmatmul.mubr.msk.bf16.vlgmr.msra.gmra.mxu1 %vm578_vm4, %v2122_v34 }
 0x52e   :  { %1806 = vmatpush3.bf16.xpose.msra.mxu1 %v730_v48  ;;  %1807 = vmatprep.mubr.msk.bf16.mxu1 %vm1947_vm3, %v1946_v0 }
 0x52f   :  { %1811 = vmatprep.subr.bf16.mxu1 %v1946_v0 }
 0x535   :  { %1808 = vmatmul.mubr.msk.bf16.vlgmr.msra.gmra.mxu1 %vm578_vm4, %v2134_v43 }
 0x536   :  { %1813 = vmatprep.mubr.msk.bf16.mxu1 %vm1947_vm3, %v1946_v0 }
 0x574   :  { %v619_v49 = vpop.f32.mrf.mxu1 }
 0x575   :  { %v773_v50 = vsel %vm772_vm5, %v619_v49, -inf }
 0x576   :  { %774 = vmax.xlane.f32.xlu0 %v773_v50  ;;  %v1791_v52 = vpop.f32.mrf.mxu1 }
 0x578   :  { %v622_v53 = vpop.f32.mrf.mxu1 }
 0x57a   :  { %v1792_v54 = vpop.f32.mrf.mxu1 }
 0x57e   :  { %v668_v55 = vpop.f32.mrf.mxu1 }
 0x57f   :  { %v776_v56 = vsel %vm772_vm5, %v668_v55, -inf }
 0x580   :  { %777 = vmax.xlane.f32.xlu1 %v776_v56  ;;  %v1797_v57 = vpop.f32.mrf.mxu1 }
 0x582   :  { %v671_v58 = vpop.f32.mrf.mxu1 }
 0x584   :  { %v1798_v59 = vpop.f32.mrf.mxu1 }
 0x5ed   :  { %v717_v60 = vpop.f32.mrf.mxu1 }
 0x5ee   :  { %v779_v61 = vsel %vm772_vm5, %v717_v60, -inf }
 0x5ef   :  { %780 = vmax.xlane.f32.xlu0 %v779_v61  ;;  %v1803_v62 = vpop.f32.mrf.mxu1 }
 0x5f1   :  { %v720_v63 = vpop.f32.mrf.mxu1 }
 0x5f3   :  { %v1804_v1 = vpop.f32.mrf.mxu1 }
 0x5f5   :  { %v766_v3 = vpop.f32.mrf.mxu1 }
 0x5f6   :  { %v782_v4 = vsel %vm772_vm5, %v766_v3, -inf }
 0x5f7   :  { %783 = vmax.xlane.f32.xlu0 %v782_v4  ;;  %v1809_v5 = vpop.f32.mrf.mxu1 }
 0x5f9   :  { %v769_v6 = vpop.f32.mrf.mxu1 }
 0x5fb   :  { %v1810_v8 = vpop.f32.mrf.mxu1 }
 0x5ff   :  { %v775_v9 = vpop.xlane.xlu0 %774 }
 0x600   :  { %v785_v10 = vsub.f32 %v619_v49, %v775_v9 }
 0x602   :  { %v789_v11 = vmul.f32 1.442695, %v785_v10  ;;  %v1897_v10 = vld [vmem:[%s2302_s1 + $0x78] sm:$0xff]  }
 0x604   :  { %1915 = vpow2.f32 %v789_v11 }
 0x609   :  { %v778_v12 = vpop.xlane.xlu1 %777 }
 0x60a   :  { %v786_v13 = vsub.f32 %v668_v55, %v778_v12  ;;  %v1898_v12 = vld [vmem:[%s2302_s1 + $0x70] sm:$0xff]  }
 0x60c   :  { %v791_v14 = vmul.f32 1.442695, %v786_v13 }
 0x60e   :  { %1917 = vpow2.f32 %v791_v14 }
 0x611   :  { %v1916_v15 = vpop.eup %1915 }
 0x612   :  { %v797_v16 = vsel %vm772_vm5, %v1916_v15, 0.0 }
 0x613   :  { %798 = vadd.xlane.f32.xlu0 %v797_v16 }
 0x61b   :  { %v1918_v17 = vpop.eup %1917 }
 0x61c   :  { %v800_v18 = vsel %vm772_vm5, %v1918_v17, 0.0 }
 0x61d   :  { %801 = vadd.xlane.f32.xlu1 %v800_v18 }
 0x62e   :  { %874 = vrot.lane.b32.xlu1 %v2109_v7, %s1951_s5  ;;  %v1952_v7 = vmov 65535  }
 0x62f   :  { %v829_v31 = vsel %vm827_vm6, 4294967295, %v1952_v7 }
 0x630   :  { %v830_v33 = vsel %vm828_vm7, %v829_v31, 0 }
 0x632   :  { %922 = vrot.lane.b32.xlu1 %v2122_v34, %s1951_s5 }
 0x678   :  { %v781_v19 = vpop.xlane.xlu0 %780 }
 0x679   :  { %v787_v20 = vsub.f32 %v717_v60, %v781_v19 }
 0x67b   :  { %v793_v21 = vmul.f32 1.442695, %v787_v20 }
 0x67d   :  { %1919 = vpow2.f32 %v793_v21 }
 0x680   :  { %v784_v22 = vpop.xlane.xlu0 %783 }
 0x681   :  { %v788_v24 = vsub.f32 %v766_v3, %v784_v22 }
 0x683   :  { %v795_v26 = vmul.f32 1.442695, %v788_v24 }
 0x685   :  { %1921 = vpow2.f32 %v795_v26 }
 0x68a   :  { %v1920_v27 = vpop.eup %1919 }
 0x68b   :  { %v803_v28 = vsel %vm772_vm5, %v1920_v27, 0.0 }
 0x68c   :  { %804 = vadd.xlane.f32.xlu0 %v803_v28 }
 0x692   :  { %v1922_v29 = vpop.eup %1921 }
 0x693   :  { %v806_v30 = vsel %vm772_vm5, %v1922_v29, 0.0 }
 0x694   :  { %807 = vadd.xlane.f32.xlu1 %v806_v30 }
 0x6a2   :  { %821 = vrot.lane.b32.xlu0 %v2100_v2, %s1951_s5  ;;  %v799_v2 = vpop.xlane.xlu0 %798 }
 0x6a5   :  { %970 = vrot.lane.b32.xlu1 %v2134_v43, %s1951_s5 }
 0x6a6   :  { %v802_v32 = vpop.xlane.xlu1 %801 }
 0x6a7   :  { %1923 = vrcp.f32 %v802_v32 }
 0x6a8   :  { %1925 = vrcp.f32 %v799_v2 }
 0x6aa   :  { %v875_v34 = vpop.permute.xlu1 %874 }
 0x6ab   :  { %v880_v35 = vand.u32 %v875_v34, %v830_v33 }
 0x6ad   :  { %1818 = vmatpush3.bf16.msra.mxu0 %v880_v35 }
 0x6ae   :  { %1829 = vmatprep.subr.bf16.mxu0 %v1946_v0  ;;  %v923_v41 = vpop.permute.xlu1 %922 }
 0x6af   :  { %v928_v48 = vand.u32 %v923_v41, %v830_v33 }
 0x6b4   :  { %v1924_v36 = vpop.eup %1923 }
 0x6b5   :  { %v814_v37 = vmul.f32 %v1924_v36, %v1918_v17  ;;  %v1926_v40 = vpop.eup %1925 }
 0x6b6   :  { %v813_v43 = vmul.f32 %v1926_v40, %v1916_v15 }
 0x6b7   :  { %v818_v38 = vpack.c.bf16 %v814_v37, %v814_v37 }
 0x6b8   :  { %v817_v46 = vpack.c.bf16 %v813_v43, %v813_v43 }
 0x6b9   :  { %1820 = vmatmul.mubr.msk.bf16.vlgmr.msra.gmra.mxu0 %vm823_vm8, %v818_v38 }
 0x6ba   :  { %1831 = vmatprep.mubr.msk.bf16.mxu0 %vm1947_vm3, %v1946_v0 }
 0x715   :  { %v805_v39 = vpop.xlane.xlu0 %804 }
 0x716   :  { %1927 = vrcp.f32 %v805_v39 }
 0x719   :  { %v822_v42 = vpop.permute.xlu0 %821 }
 0x71a   :  { %v832_v44 = vand.u32 %v830_v33, %v822_v42 }
 0x71c   :  { %1812 = vmatpush3.bf16.msra.mxu1 %v832_v44 }
 0x71d   :  { %v808_v45 = vpop.xlane.xlu1 %807  ;;  %1823 = vmatprep.subr.bf16.mxu1 %v1946_v0 }
 0x71e   :  { %1929 = vrcp.f32 %v808_v45 }
 0x71f   :  { %1814 = vmatmul.mubr.msk.bf16.vlgmr.msra.gmra.mxu1 %vm823_vm8, %v817_v46 }
 0x720   :  { %1824 = vmatpush3.bf16.msra.mxu1 %v928_v48  ;;  %1825 = vmatprep.mubr.msk.bf16.mxu1 %vm1947_vm3, %v1946_v0 }
 0x721   :  { %v971_v49 = vpop.permute.xlu1 %970  ;;  %1835 = vmatprep.subr.bf16.mxu1 %v1946_v0 }
 0x722   :  { %v976_v50 = vand.u32 %v971_v49, %v830_v33 }
 0x723   :  { %v1928_v52 = vpop.eup %1927 }
 0x724   :  { %1830 = vmatpush3.bf16.msra.mxu0 %v976_v50  ;;  %v815_v53 = vmul.f32 %v1928_v52, %v1920_v27 }
 0x725   :  { %1843 = vmatprep.subr.bf16.mxu0 %v1946_v0 }
 0x726   :  { %v819_v54 = vpack.c.bf16 %v815_v53, %v815_v53 }
 0x728   :  { %1826 = vmatmul.mubr.msk.bf16.vlgmr.msra.gmra.mxu1 %vm823_vm8, %v819_v54  ;;  %v1723_v54 = vld [vmem:[%s2304_s2 + $0xf] ss:$0 sm:$0xff] }
 0x729   :  { %1839 = vmatprep.mubr.msk.bf16.mxu1 %vm1947_vm3, %v1946_v0  ;;  %1836 = vmatpush3.bf16.msra.mxu1 %v1897_v10 }
 0x72a   :  { %1837 = vmatprep.subr.bf16.mxu1 %v1946_v0 }
 0x72b   :  { %v1930_v55 = vpop.eup %1929 }
 0x72c   :  { %v816_v56 = vmul.f32 %v1930_v55, %v1922_v29 }
 0x72d   :  { %1838 = vmatpush3.bf16.msra.mxu1 %v1898_v12 }
 0x72e   :  { %v820_v57 = vpack.c.bf16 %v816_v56, %v816_v56  ;;  %1851 = vmatprep.subr.bf16.mxu1 %v1946_v0 }
 0x730   :  { %1832 = vmatmul.mubr.msk.bf16.vlgmr.msra.gmra.mxu0 %vm823_vm8, %v820_v57 }
 0x731   :  { %1847 = vmatprep.mubr.msk.bf16.mxu0 %vm1947_vm3, %v1946_v0 }
 0x779   :  { %v916_v58 = vpop.f32.mrf.mxu0 }
 0x77b   :  { %v1821_v59 = vpop.f32.mrf.mxu0 }
 0x77d   :  { %v919_v60 = vpop.f32.mrf.mxu0 }
 0x77f   :  { %v1822_v61 = vpop.f32.mrf.mxu0 }
 0x7df   :  { %v868_v62 = vpop.f32.mrf.mxu1 }
 0x7e1   :  { %v1815_v63 = vpop.f32.mrf.mxu1 }
 0x7e3   :  { %v871_v1 = vpop.f32.mrf.mxu1 }
 0x7e5   :  { %v1816_v3 = vpop.f32.mrf.mxu1 }
 0x7e8   :  { %v964_v4 = vpop.f32.mrf.mxu1 }
 0x7e9   :  { %1020 = vrot.lane.b32.xlu0 %v964_v4, %s1953_s6 }
 0x7ea   :  { %v1827_v5 = vpop.f32.mrf.mxu1 }
 0x7ec   :  { %v967_v6 = vpop.f32.mrf.mxu1 }
 0x7ee   :  { %v1828_v8 = vpop.f32.mrf.mxu1 }
 0x7f0   :  { %v1012_v9 = vpop.f32.mrf.mxu0 }
 0x7f1   :  { %1022 = vrot.lane.b32.xlu1 %v1012_v9, %s1953_s6 }
 0x7f2   :  { %v1833_v11 = vpop.f32.mrf.mxu0 }
 0x7f4   :  { %v1015_v13 = vpop.f32.mrf.mxu0 }
 0x7f5   :  { %v1900_v13 = vld [vmem:[%s2302_s1 + $0x80] sm:$0xff]  }
 0x7f6   :  { %v1834_v14 = vpop.f32.mrf.mxu0 }
 0x85b   :  { %v1021_v15 = vpop.permute.xlu0 %1020 }
 0x85c   :  { %v1026_v16 = vsel %vm578_vm4, %v868_v62, %v1021_v15 }
 0x85d   :  { %v1037_v17 = vrot.slane %v1026_v16, %v2074_v25  ;;  %v1030_v19 = vcombine.high %v1026_v16, %v1026_v16 }
 0x85f   :  { %v1045_v18 = vcombine.high %v1037_v17, %v1037_v17  ;;  %v1052_v21 = vrot.slane %v1037_v17, %v2074_v25  ;;  %v1044_v24 = vrot.slane %v1030_v19, %v2074_v25 }
 0x861   :  { %v1066_v20 = vrot.slane %v1045_v18, %v2074_v25  ;;  %v1059_v33 = vrot.slane %v1044_v24, %v2074_v25 }
 0x863   :  { %v1023_v22 = vpop.permute.xlu1 %1022  ;;  %v1108_v27 = vcombine.low %v1052_v21, %v1066_v20  ;;  %v1722_v28 = vcombine.high %v1052_v21, %v1066_v20 }
 0x864   :  { %v1027_v26 = vsel %vm578_vm4, %v916_v58, %v1023_v22  ;;  %v1727_v22 = vld [vmem:[%s2304_s2 + $0x10] ss:$0 sm:$0xff] }
 0x865   :  { %v1069_v29 = vcombine.high %v1027_v26, %v1027_v26  ;;  %v1076_v30 = vrot.slane %v1027_v26, %v2074_v25  ;;  %v1118_v34 = vrot.slane %v1108_v27, %v2074_v25  ;;  %v1125_v35 = vrot.slane %v1722_v28, %v2074_v25  ;;  %v1728_v28 = vld [vmem:[%s2304_s2 + $0x11] ss:$0 sm:$0xff] }
 0x867   :  { %v1083_v7 = vrot.slane %v1069_v29, %v2074_v25  ;;  %v1084_v31 = vcombine.high %v1076_v30, %v1076_v30  ;;  %v1091_v32 = vrot.slane %v1076_v30, %v2074_v25  ;;  %v1140_v41 = vcombine.low %v1118_v34, %v1125_v35  ;;  %v1903_v34 = vld [vmem:[%s2302_s1 + $0x98] sm:$0xff]   ;;  %v1904_v35 = vld [vmem:[%s2302_s1 + $0x90] sm:$0xff]  }
 0x869   :  { %v1105_v36 = vrot.slane %v1084_v31, %v2074_v25  ;;  %v1106_v37 = vcombine.high %v1091_v32, %v1091_v32  ;;  %v1110_v38 = vcombine.low %v1059_v33, %v1091_v32  ;;  %v1098_v2 = vrot.slane %v1083_v7, %v2074_v25  ;;  %v1901_v32 = vld [vmem:[%s2302_s1 + $0xa8] sm:$0xff]   ;;  %v1902_v33 = vld [vmem:[%s2302_s1 + $0xa0] sm:$0xff]  }
 0x86a   :  { %v1148_v48 = vrot.slane %v1140_v41, %v2074_v25 }
 0x86b   :  { %v1107_v39 = vcombine.high %v1105_v36, %v1105_v36  ;;  %v1111_v40 = vcombine.low %v1105_v36, %v1106_v37  ;;  %v1132_v42 = vrot.slane %v1110_v38, %v2074_v25  ;;  %v1729_v36 = vld [vmem:[%s2304_s2 + $0x12] ss:$0 sm:$0xff] }
 0x86d   :  { %v1139_v43 = vrot.slane %v1111_v40, %v2074_v25  ;;  %v1157_v44 = vcombine.low %v1107_v39, %v1098_v2 }
 0x86f   :  { %v1141_v45 = vcombine.low %v1132_v42, %v1139_v43  ;;  %v1164_v46 = vrot.slane %v1157_v44, %v2074_v25 }
 0x871   :  { %v1155_v49 = vrot.slane %v1141_v45, %v2074_v25  ;;  %v1171_v50 = vrot.slane %v1164_v46, %v2074_v25 }
 0x873   :  { %v1156_v52 = vcombine.low %v1148_v48, %v1155_v49 }
 0x875   :  { %v1174_v53 = vpack.c.bf16 %v1171_v50, %v1156_v52 }
 0x877   :  { %1840 = vmatmul.mubr.msk.bf16.vlgmr.msra.gmra.mxu1 %vm169_vm1, %v1174_v53 }
 0x878   :  { %1859 = vmatprep.mubr.msk.bf16.mxu1 %vm1947_vm3, %v1946_v0  ;;  %1852 = vmatpush3.bf16.msra.mxu1 %v1901_v32 }
 0x879   :  { %1853 = vmatprep.subr.bf16.mxu1 %v1946_v0 }
 0x87c   :  { %1854 = vmatpush3.bf16.msra.mxu1 %v1902_v33 }
 0x87d   :  { %1855 = vmatprep.subr.bf16.mxu1 %v1946_v0 }
 0x880   :  { %1856 = vmatpush3.bf16.msra.mxu1 %v1903_v34 }
 0x881   :  { %1857 = vmatprep.subr.bf16.mxu1 %v1946_v0 }
 0x884   :  { %1858 = vmatpush3.bf16.msra.mxu1 %v1904_v35 }
 0x937   :  { %v1233_v55 = vpop.f32.mrf.mxu1 }
 0x938   :  { %v1234_v56 = vadd.f32 %v1723_v54, %v1233_v55 }
 0x939   :  { %v1841_v57 = vpop.f32.mrf.mxu1 }
 0x93a   :  { %v2218_v58 = vadd.f32 %v1234_v56, %v2033_v47 }
 0x93b   :  { %v1236_v59 = vpop.f32.mrf.mxu1 }
 0x93c   :  { %v1237_v60 = vadd.f32 %v1723_v54, %v1236_v59  ;;  %v1242_v61 = vsel %vm169_vm1, %v2218_v58, 0.0  ;;  %v1740_v59 = vld [vmem:[%s2304_s2 + $0x13] ss:$0 sm:$0xff] }
 0x93d   :  { %1243 = vadd.xlane.f32.xlu0 %v1242_v61  ;;  %v1842_v62 = vpop.f32.mrf.mxu1 }
 0x93e   :  { %v1241_v63 = vadd.f32 %v1237_v60, %v2037_v51  ;;  %v1899_v51 = vld [vmem:[%s2302_s1 + $0x88] sm:$0xff]  }
 0x93f   :  { %1844 = vmatpush3.bf16.msra.mxu0 %v1899_v51  ;;  %v1507_v51 = vsub.s32 1, %v2068_v23 }
 0x940   :  { %v1245_v1 = vsel %vm173_vm2, %v1241_v63, 0.0  ;;  %1845 = vmatprep.subr.bf16.mxu0 %v1946_v0 }
 0x941   :  { %1246 = vadd.xlane.f32.xlu1 %v1245_v1 }
 0x943   :  { %1846 = vmatpush3.bf16.msra.mxu0 %v1900_v13 }
 0x944   :  { %1863 = vmatprep.subr.bf16.mxu0 %v1946_v0 }
 0x9c6   :  { %v1244_v3 = vpop.xlane.xlu0 %1243 }
 0x9c7   :  { %v1248_v4 = vmul.f32 0.03125, %v1244_v3 }
 0x9c9   :  { %v1250_v5 = vsub.f32 %v2218_v58, %v1248_v4 }
 0x9ca   :  { %v1247_v6 = vpop.xlane.xlu1 %1246 }
 0x9cb   :  { %v1249_v8 = vmul.f32 0.03125, %v1247_v6  ;;  %v1252_v47 = vmul.f32 %v1250_v5, %v1250_v5 }
 0x9cd   :  { %v1251_v9 = vsub.f32 %v1241_v63, %v1249_v8  ;;  %v1254_v10 = vsel %vm169_vm1, %v1252_v47, 0.0 }
 0x9ce   :  { %1255 = vadd.xlane.f32.xlu0 %v1254_v10 }
 0x9cf   :  { %v1253_v11 = vmul.f32 %v1251_v9, %v1251_v9 }
 0x9d1   :  { %v1257_v12 = vsel %vm173_vm2, %v1253_v11, 0.0 }
 0x9d2   :  { %1258 = vadd.xlane.f32.xlu0 %v1257_v12  ;;  %v1503_v12 = vsub.s32 0, %v2068_v23  ;;  %v1905_v23 = vld [vmem:[%s2302_s1 + $0xb8] sm:$0xff]  }
 0xa57   :  { %v1256_v14 = vpop.xlane.xlu0 %1255 }
 0xa58   :  { %v1260_v15 = vmul.f32 0.03125, %v1256_v14 }
 0xa5a   :  { %v1262_v16 = vadd.f32 1e-05, %v1260_v15 }
 0xa5b   :  { %v1259_v17 = vpop.xlane.xlu0 %1258 }
 0xa5c   :  { %1931 = vrsqrt.f32 %v1262_v16  ;;  %v1261_v18 = vmul.f32 0.03125, %v1259_v17 }
 0xa5e   :  { %v1263_v19 = vadd.f32 1e-05, %v1261_v18 }
 0xa60   :  { %1933 = vrsqrt.f32 %v1263_v19 }
 0xa69   :  { %v1932_v20 = vpop.eup %1931 }
 0xa6a   :  { %v1266_v21 = vmul.f32 %v1932_v20, %v1250_v5 }
 0xa6c   :  { %v1273_v27 = vmul.f32 %v1727_v22, %v1266_v21 }
 0xa6d   :  { %v1934_v24 = vpop.eup %1933 }
 0xa6e   :  { %v1267_v26 = vmul.f32 %v1934_v24, %v1251_v9  ;;  %v1280_v30 = vadd.f32 %v1728_v28, %v1273_v27  ;;  %v1906_v27 = vld [vmem:[%s2302_s1 + $0xb0] sm:$0xff]  }
 0xa70   :  { %v1274_v29 = vmul.f32 %v1727_v22, %v1267_v26 }
 0xa72   :  { %v1281_v7 = vadd.f32 %v1728_v28, %v1274_v29 }
 0xa74   :  { %v1282_v31 = vpack.c.bf16 %v1281_v7, %v1280_v30  ;;  %v1741_v7 = vld [vmem:[%s2304_s2 + $0x14] ss:$0 sm:$0xff] }
 0xa75   :  { %v1564_v32 = vrot.slane %v1741_v7, %v2074_v25 }
 0xa76   :  { %1848 = vmatmul.mubr.msk.bf16.vlgmr.msra.gmra.mxu0 %vm169_vm1, %v1282_v31  ;;  %v1742_v31 = vld [vmem:[%s2304_s2 + $0x15] ss:$0 sm:$0xff] }
 0xa77   :  { %1867 = vmatprep.mubr.msk.bf16.mxu0 %vm1947_vm3, %v1946_v0  ;;  %1864 = vmatpush3.bf16.msra.mxu0 %v1905_v23  ;;  %v1596_v33 = vrot.slane %v1742_v31, %v2074_v25  ;;  %v1565_v34 = vcombine.high %v1564_v32, %v1564_v32 }
 0xa78   :  { %1865 = vmatprep.subr.bf16.mxu0 %v1946_v0 }
 0xa79   :  { %v1597_v35 = vcombine.high %v1596_v33, %v1596_v33 }
 0xa7b   :  { %1866 = vmatpush3.bf16.msra.mxu0 %v1906_v27 }
 0xb36   :  { %v1341_v37 = vpop.f32.mrf.mxu0 }
 0xb37   :  { %v1342_v38 = vadd.f32 %v1729_v36, %v1341_v37  ;;  %v1579_v37 = vrot.slane %v1565_v34, %v2074_v25 }
 0xb38   :  { %v1849_v2 = vpop.f32.mrf.mxu0 }
 0xb39   :  { %v1733_v39 = vmul.f32 -1.702, %v1342_v38 }
 0xb3a   :  { %v1344_v40 = vpop.f32.mrf.mxu0 }
 0xb3b   :  { %v1352_v41 = vmul.f32 1.442695, %v1733_v39  ;;  %v1345_v42 = vadd.f32 %v1729_v36, %v1344_v40  ;;  %v1572_v36 = vrot.slane %v1564_v32, %v2074_v25 }
 0xb3c   :  { %v1850_v43 = vpop.f32.mrf.mxu0 }
 0xb3d   :  { %1935 = vpow2.f32 %v1352_v41  ;;  %v1734_v44 = vmul.f32 -1.702, %v1345_v42  ;;  %v1604_v41 = vrot.slane %v1596_v33, %v2074_v25 }
 0xb3f   :  { %v1354_v45 = vmul.f32 1.442695, %v1734_v44 }
 0xb41   :  { %1937 = vpow2.f32 %v1354_v45 }
 0xb4a   :  { %v1936_v46 = vpop.eup %1935 }
 0xb4b   :  { %v1356_v48 = vadd.f32 1.0, %v1936_v46 }
 0xb4d   :  { %1939 = vrcp.f32 %v1356_v48 }
 0xb4e   :  { %v1938_v49 = vpop.eup %1937 }
 0xb4f   :  { %v1357_v50 = vadd.f32 1.0, %v1938_v49 }
 0xb51   :  { %1941 = vrcp.f32 %v1357_v50 }
 0xb5a   :  { %v1940_v52 = vpop.eup %1939 }
 0xb5b   :  { %v1362_v54 = vmul.f32 %v1940_v52, %v1342_v38 }
 0xb5e   :  { %v1942_v53 = vpop.eup %1941 }
 0xb5f   :  { %v1363_v55 = vmul.f32 %v1942_v53, %v1345_v42  ;;  %v1611_v42 = vrot.slane %v1597_v35, %v2074_v25 }
 0xb61   :  { %v1364_v56 = vpack.c.bf16 %v1363_v55, %v1362_v54 }
 0xb63   :  { %1860 = vmatmul.mubr.msk.bf16.vlgmr.msra.gmra.mxu1 %vm124_vm0, %v1364_v56 }
 0xc23   :  { %v1434_v57 = vpop.f32.mrf.mxu1 }
 0xc24   :  { %v1440_v60 = vadd.f32 %v1434_v57, %v2218_v58 }
 0xc25   :  { %v1861_v61 = vpop.f32.mrf.mxu1 }
 0xc26   :  { %v1446_v62 = vadd.f32 %v1740_v59, %v1440_v60 }
 0xc27   :  { %v1437_v63 = vpop.f32.mrf.mxu1 }
 0xc28   :  { %v1448_v1 = vcombine.high %v1446_v62, %v1446_v62  ;;  %v1455_v4 = vrot.slane %v1446_v62, %v2074_v25 }
 0xc29   :  { %v1862_v3 = vpop.f32.mrf.mxu1 }
 0xc2a   :  { %v1462_v5 = vrot.slane %v1448_v1, %v2074_v25  ;;  %v1470_v8 = vrot.slane %v1455_v4, %v2074_v25 }
 0xc2c   :  { %v1463_v6 = vcombine.high %v1462_v5, %v1462_v5 }
 0xc2e   :  { %v1477_v47 = vrot.slane %v1463_v6, %v2074_v25 }
 0xc30   :  { %v1480_v9 = vcombine.low %v1470_v8, %v1477_v47 }
 0xc32   :  { %v1487_v10 = vrot.slane %v1480_v9, %v2074_v25 }
 0xc34   :  { %v1494_v11 = vrot.slane %v1487_v10, %v2074_v25 }
 0xc36   :  { %v1496_v58 = vsel %vm173_vm2, %v1494_v11, 0.0 }
 0xc37   :  { %1497 = vadd.xlane.f32.xlu0 %v1496_v58 }
 0xcc0   :  { %v1498_v13 = vpop.xlane.xlu0 %1497 }
 0xcc1   :  { %v1499_v14 = vmul.f32 0.03125, %v1498_v13 }
 0xcc3   :  { %v1504_v15 = vrot.slane %v1499_v14, %v1503_v12  ;;  %v1508_v16 = vrot.slane %v1499_v14, %v1507_v51 }
 0xcc5   :  { %v1511_v17 = vsub.f32 %v1470_v8, %v1504_v15  ;;  %v1512_v18 = vsub.f32 %v1477_v47, %v1508_v16 }
 0xcc7   :  { %v1513_v19 = vmul.f32 %v1511_v17, %v1511_v17  ;;  %v1514_v20 = vmul.f32 %v1512_v18, %v1512_v18 }
 0xcc9   :  { %v1517_v21 = vcombine.low %v1513_v19, %v1514_v20 }
 0xccb   :  { %v1524_v22 = vrot.slane %v1517_v21, %v2074_v25 }
 0xccd   :  { %v1531_v24 = vrot.slane %v1524_v22, %v2074_v25 }
 0xccf   :  { %v1533_v26 = vsel %vm173_vm2, %v1531_v24, 0.0 }
 0xcd0   :  { %1534 = vadd.xlane.f32.xlu1 %v1533_v26 }
 0xd59   :  { %v1535_v28 = vpop.xlane.xlu1 %1534 }
 0xd5a   :  { %v1536_v29 = vmul.f32 0.03125, %v1535_v28 }
 0xd5c   :  { %v1537_v30 = vadd.f32 1e-05, %v1536_v29 }
 0xd5e   :  { %1943 = vrsqrt.f32 %v1537_v30 }
 0xd6b   :  { %v1944_v0 = vpop.eup %1943 }
 0xd6c   :  { %v1543_v38 = vrot.slane %v1944_v0, %v1503_v12  ;;  %v1547_v2 = vrot.slane %v1944_v0, %v1507_v51 }
 0xd6e   :  { %v1550_v39 = vmul.f32 %v1543_v38, %v1511_v17  ;;  %v1551_v40 = vmul.f32 %v1547_v2, %v1512_v18 }
 0xd70   :  { %v1582_v43 = vmul.f32 %v1572_v36, %v1550_v39  ;;  %v1583_v44 = vmul.f32 %v1579_v37, %v1551_v40 }
 0xd72   :  { %v1614_v45 = vadd.f32 %v1604_v41, %v1582_v43  ;;  %v1615_v46 = vadd.f32 %v1611_v42, %v1583_v44 }
 0xd74   :  { %v1616_v48 = vpack.c.bf16 %v1614_v45, %v1614_v45  ;;  %v1617_v49 = vpack.c.bf16 %v1615_v46, %v1615_v46 }
 0xd76   :  { %v1625_v50 = vunpack.c.l.b16 %v1617_v49  ;;  %v1624_v52 = vunpack.c.l.b16 %v1616_v48 }
 0xd78   :  { %v1626_v53 = vrot.slane %v1625_v50, 7 }
 0xd7a   :  { %v1628_v54 = vsel %vm1627_vm9, %v1626_v53, %v1624_v52 }
 0xd7b   :  { %v1629_v55 = vpack.c.b16 %v1628_v54, %v1628_v54 }
 0xd7d   :  { %1868 = vmatmul.mubr.msk.bf16.vlgmr.msra.gmra.mxu0 %vm169_vm1, %v1629_v55 }
 0xe3d   :  { %v1679_v56 = vpop.f32.mrf.mxu0 }
 0xe3e   :  { %1685 = vst [vmem:[%s2305_s3] sm:$0x3] %v1679_v56 }
 0xe3f   :  { %v1869_v25 = vpop.f32.mrf.mxu0 }
 0xe41   :  { %v1682_v57 = vpop.f32.mrf.mxu0 }
 0xe43   :  { %v1870_v59 = vpop.f32.mrf.mxu0 }

</bundles_post_ra>
